<compile_context>
chip_gen: v6e
topology: v6e:2x2x1
jax: 0.10.0
libtpu: 0.0.40
codegen_flags: <defaults>
</compile_context>

<pallas_src>
import numpy as np
import jax
import jax.numpy as jnp
from jax import lax
from jax.experimental import pallas as pl
from jax.experimental.pallas import tpu as pltpu

_BN_EPS = 1e-5


def _round_up(x, m):
    return ((x + m - 1) // m) * m


# ---------------------------------------------------------------------------
# Fused per-level Pallas kernel (one image per grid step)
# ---------------------------------------------------------------------------
def _make_level_kernel(has_prev: bool, last: bool):
    def kernel(*refs):
        it = iter(refs)
        x_ref = next(it)            # (H, Lin)        bf16 level input (one image)
        gc_ref = next(it)           # (Lin, 3*Lc)     cvt width-conv mats, BN scale folded (bf16)
        ash_ref = next(it)          # (2, H, H)       cvt row-shift taps dy=0 / dy=2 (f32)
        ct_ref = next(it)           # (1, Lc)         cvt shift: conv bias + BN folded (f32)
        if has_prev:
            p_ref = next(it)        # (H, Lp)         previous level output (bf16)
            gp_ref = next(it)       # (Lp, 3*Lm)      main conv mats, prev-channel part (bf16)
        gm_ref = next(it)           # (Lc, 3*Lm)      main conv mats, cvt-channel part (bf16)
        ahm_ref = next(it)          # (3, Ho, H)      main height (upsample + pad) taps (f32)
        mt_ref = next(it)           # (1, Lm)         main shift (f32)
        o_ref = next(it)            # (Ho, Lm)        level output

        f32 = jnp.float32

        # ---- cvt block: 3x3 conv (+bias) + BN + LeakyReLU(0.2) -------------
        # One wide MXU matmul produces the three tap-row partials side by side
        # (each segment is 128-lane aligned).
        zz = jnp.dot(x_ref[...], gc_ref[...], preferred_element_type=f32)
        lc = zz.shape[1] // 3
        z0, z1, z2 = zz[:, :lc], zz[:, lc:2 * lc], zz[:, 2 * lc:]
        # dy=1 height tap is the identity: accumulate directly in f32.
        # dy=0/2 are +/-1 row shifts with a zeroed boundary row; with batch on
        # the grid they are tiny per-image (H, H) matrices.
        # TODO(synk): at production H these two shifts should move onto the XLU
        #             (pltpu.roll + boundary mask) instead of MXU matmuls.
        acc = z1 + jnp.dot(ash_ref[0], z0, preferred_element_type=f32)
        acc = acc + jnp.dot(ash_ref[1], z2, preferred_element_type=f32)
        c = acc + ct_ref[...]
        c = jnp.where(c >= 0, c, 0.2 * c)
        # TODO(synk): Dropout after the cvt block is eval-mode identity.
        cb = c.astype(jnp.bfloat16)

        # ---- main block: (upsample) -> 3x3 conv over [prev, cvt] ------------
        zz2 = jnp.dot(cb, gm_ref[...], preferred_element_type=f32)
        if has_prev:
            zz2 = zz2 + jnp.dot(p_ref[...], gp_ref[...], preferred_element_type=f32)
        lm = zz2.shape[1] // 3
        # Height taps kept in f32 (flops are ~H/(W*Cin) of the G matmuls), so
        # no intermediate f32->bf16 quantization between the chained matmuls.
        acc2 = jnp.dot(ahm_ref[0], zz2[:, :lm], preferred_element_type=f32)
        acc2 = acc2 + jnp.dot(ahm_ref[1], zz2[:, lm:2 * lm], preferred_element_type=f32)
        acc2 = acc2 + jnp.dot(ahm_ref[2], zz2[:, 2 * lm:], preferred_element_type=f32)
        y = acc2 + mt_ref[...]
        if not last:
            y = jnp.where(y >= 0, y, 0.2 * y)
        o_ref[...] = y.astype(o_ref.dtype)

    return kernel


def _run_level(ops, x_flat, prev):
    has_prev = prev is not None
    last = ops['last']
    N = x_flat.shape[0]
    H, Hu = ops['H'], ops['Hu']
    lm_pad = ops['lm_pad']

    args = [x_flat, ops['gc'], ops['ash'], ops['ct']]
    specs = [
        pl.BlockSpec((None, H, ops['lin_pad']), lambda n: (n, 0, 0)),
        pl.BlockSpec(ops['gc'].shape, lambda n: (0, 0)),
        pl.BlockSpec(ops['ash'].shape, lambda n: (0, 0, 0)),
        pl.BlockSpec(ops['ct'].shape, lambda n: (0, 0)),
    ]
    if has_prev:
        args += [prev, ops['gp']]
        specs += [
            pl.BlockSpec((None, H, prev.shape[2]), lambda n: (n, 0, 0)),
            pl.BlockSpec(ops['gp'].shape, lambda n: (0, 0)),
        ]
    args += [ops['gm'], ops['ahm'], ops['mt']]
    specs += [
        pl.BlockSpec(ops['gm'].shape, lambda n: (0, 0)),
        pl.BlockSpec(ops['ahm'].shape, lambda n: (0, 0, 0)),
        pl.BlockSpec(ops['mt'].shape, lambda n: (0, 0)),
    ]
    out_dtype = jnp.float32 if last else jnp.bfloat16

    # TODO(synk): for production-sized levels, add K/N grid axes over the G
    #             matrices with a VMEM scratch accumulator and an explicit
    #             vmem_limit_bytes; whole-level residency is fine at toy sizes.
    return pl.pallas_call(
        _make_level_kernel(has_prev, last),
        out_shape=jax.ShapeDtypeStruct((N, Hu, lm_pad), out_dtype),
        grid=(N,),
        in_specs=specs,
        out_specs=pl.BlockSpec((None, Hu, lm_pad), lambda n: (n, 0, 0)),
        compiler_params=pltpu.CompilerParams(
            dimension_semantics=("parallel",)),
    )(*args)


# ---------------------------------------------------------------------------
# Host-side folding: upsample/pad/conv-weight matrices
# ---------------------------------------------------------------------------
def _bilinear_matrix(n):
    """PyTorch Upsample(scale_factor=2, mode='bilinear', align_corners=True)."""
    out = 2 * n
    M = np.zeros((out, n), np.float32)
    if n == 1:
        M[:, 0] = 1.0
        return M
    for o in range(out):
        src = o * (n - 1) / (out - 1)
        i0 = int(np.floor(src))
        i1 = min(i0 + 1, n - 1)
        w1 = src - i0
        M[o, i0] += 1.0 - w1
        M[o, i1] += w1
    return M


def _resample_matrix(n, upsample):
    return _bilinear_matrix(n) if upsample else np.eye(n, dtype=np.float32)


def _height_taps(H, upsample):
    """A_dy[o, h] = Uh_pad[o + dy, h], per image (no batch folding)."""
    U = _resample_matrix(H, upsample)                        # (Hu, H)
    Hu = U.shape[0]
    Upad = np.zeros((Hu + 2, H), np.float32)
    Upad[1:-1] = U                                           # zero-pad rows
    return np.stack([Upad[dy:dy + Hu] for dy in range(3)], 0)   # (3, Hu, H)


def _width_conv_mats_cat(W, upsample, w_hwio, out_scale, rows_pad, seg_pad):
    """Fused [G_0 | G_1 | G_2], each segment padded to seg_pad lanes.

    G_dy[(w,ci),(wo,co)] = sum_dx Uw_pad[wo+dx, w] * w[dy,dx,ci,co] * scale[co]
    """
    Cin, Cout = w_hwio.shape[2], w_hwio.shape[3]
    U = _resample_matrix(W, upsample)                        # (Wu, W)
    Wu = U.shape[0]
    Upad = np.zeros((Wu + 2, W), np.float32)
    Upad[1:-1] = U
    w_scaled = w_hwio * out_scale[None, None, None, :]       # BN scale fold (f32)
    Gcat = np.zeros((rows_pad, 3 * seg_pad), np.float32)
    for dy in range(3):
        G = np.zeros((W * Cin, Wu * Cout), np.float32)
        for dx in range(3):
            S = Upad[dx:dx + Wu]                             # (Wu, W)
            G += np.einsum('ow,ck->wcok', S,
                           w_scaled[dy, dx]).reshape(W * Cin, Wu * Cout)
        Gcat[:W * Cin, dy * seg_pad: dy * seg_pad + Wu * Cout] = G
    return Gcat


# ---------------------------------------------------------------------------
# Deterministic parameter construction (mirrors Decoder.__init__)
# ---------------------------------------------------------------------------
def _make_conv(key, cin, cout, std=0.1):
    k1, k2 = jax.random.split(key)
    return {'w': jax.random.normal(k1, (3, 3, cin, cout), jnp.float32) * std,
            'b': jax.random.normal(k2, (cout,), jnp.float32) * std,
            'scale': jnp.ones((cout,), jnp.float32),
            'shift': jnp.zeros((cout,), jnp.float32)}


def _make_conv_bn(key, cin, cout, std=0.1):
    k1, k2, k3 = jax.random.split(key, 3)
    p = _make_conv(k1, cin, cout, std)
    gamma = 1.0 + 0.1 * jax.random.normal(k2, (cout,), jnp.float32)
    beta = 0.1 * jax.random.normal(k3, (cout,), jnp.float32)
    run_mean = jnp.zeros((cout,), jnp.float32)
    run_var = jnp.ones((cout,), jnp.float32)
    scale = gamma / jnp.sqrt(run_var + _BN_EPS)              # eval-mode BN fold
    shift = beta - run_mean * scale
    p['scale'], p['shift'] = scale, shift
    return p


def build_decoder_params(key, fmap_base, max_res_log2, num_classes,
                         fmap_max=512, decoder_fmap_max=512):
    in_channels = [min(fmap_max, int(fmap_base // 2.0 ** (i - 1)))
                   for i in range(2, max_res_log2 + 1)]
    features = [min(decoder_fmap_max, f) for f in in_channels] + [num_classes]
    num_feats = len(in_channels)
    params = {'num_feats': num_feats, 'in_channels': in_channels,
              'features': features, 'cvt': {}, 'main': {}}
    for i in range(num_feats):
        key, k = jax.random.split(key)
        params['cvt'][i] = _make_conv_bn(k, in_channels[i], features[i])
    for i in range(num_feats):
        cin = features[i]
        if i > 0:                        # concat([prev, cvt]) doubles channels
            cin = 2 * cin
        key, k = jax.random.split(key)
        if i < num_feats - 1:
            params['main'][i] = _make_conv_bn(k, cin, features[i + 1])
        else:
            params['main'][i] = _make_conv(k, cin, features[i + 1])
    return params


def compile_level_operands(params, level, base_res):
    num_feats = params['num_feats']
    last = (level == num_feats - 1)
    upsample = not last
    has_prev = level > 0
    H = W = base_res * (2 ** level)
    Cin = params['in_channels'][level]
    Ccvt = params['features'][level]
    Cout = params['features'][level + 1]
    Cprev = params['features'][level] if has_prev else 0
    Hu = 2 * H if upsample else H
    Wu = 2 * W if upsample else W
    lin_pad = _round_up(W * Cin, 128)          # lane-dense operands (>=128)
    lc_pad = _round_up(W * Ccvt, 128)
    lm_pad = _round_up(Wu * Cout, 128)
    lp_pad = _round_up(W * Cprev, 128) if has_prev else 0
    bf = jnp.bfloat16

    cvt = params['cvt'][level]
    sc_c = np.asarray(cvt['scale'])
    sh_c = np.asarray(cvt['shift']) + np.asarray(cvt['b']) * sc_c   # fold bias
    main = params['main'][level]
    w_main = np.asarray(main['w'])
    sc_m = np.asarray(main['scale'])
    sh_m = np.asarray(main['shift']) + np.asarray(main['b']) * sc_m

    taps_c = _height_taps(H, False)                 # (3, H, H); taps_c[1] == I
    ash = np.stack([taps_c[0], taps_c[2]], 0)       # only the +/-1 row shifts

    ct = np.zeros((1, lc_pad), np.float32)
    ct[0, :W * Ccvt] = np.tile(sh_c, W)
    mt = np.zeros((1, lm_pad), np.float32)
    mt[0, :Wu * Cout] = np.tile(sh_m, Wu)

    ops = {'last': last, 'has_prev': has_prev, 'H': H, 'Hu': Hu,
           'lin_pad': lin_pad, 'lc_pad': lc_pad, 'lm_pad': lm_pad,
           'real_out_lanes': Wu * Cout,
           'gc': jnp.asarray(_width_conv_mats_cat(
               W, False, np.asarray(cvt['w']), sc_c, lin_pad, lc_pad), bf),
           'ash': jnp.asarray(ash, jnp.float32),
           'ct': jnp.asarray(ct, jnp.float32),
           'ahm': jnp.asarray(_height_taps(H, upsample), jnp.float32),
           'mt': jnp.asarray(mt, jnp.float32)}
    if has_prev:
        # concat([prev, cvt], channel) handled by splitting the conv weight.
        ops['gp'] = jnp.asarray(_width_conv_mats_cat(
            W, upsample, w_main[:, :, :Cprev, :], sc_m, lp_pad, lm_pad), bf)
        w_cvt_part = w_main[:, :, Cprev:, :]
    else:
        w_cvt_part = w_main
    ops['gm'] = jnp.asarray(_width_conv_mats_cat(
        W, upsample, w_cvt_part, sc_m, lc_pad, lm_pad), bf)
    return ops


# ---------------------------------------------------------------------------
# Decoder forward: Pallas path (lane-flattened bf16 activations between levels)
# ---------------------------------------------------------------------------
def decoder_forward_pallas(level_ops, inputs_nhwc):
    prev = None
    out = None
    for ops, x in zip(level_ops, inputs_nhwc):
        Nb, H, W, C = x.shape
        x_flat = x.reshape(Nb, H, W * C).astype(jnp.bfloat16)   # host-side bf16
        pad = ops['lin_pad'] - W * C
        if pad:
            x_flat = jnp.pad(x_flat, ((0, 0), (0, 0), (0, pad)))
        out = _run_level(ops, x_flat, prev)
        prev = out
    return out                      # (N, H_final, lm_pad) f32, lane-padded


# ---------------------------------------------------------------------------
# Pure-JAX reference (f32, NHWC) for a numerical sanity check
# ---------------------------------------------------------------------------
def _conv_block_ref(x, p, leaky):
    y = lax.conv_general_dilated(
        x, p['w'], (1, 1), 'SAME',
        dimension_numbers=('NHWC', 'HWIO', 'NHWC'),
        precision=lax.Precision.HIGHEST)
    y = y + p['b'].reshape(1, 1, 1, -1)
    y = y * p['scale'].reshape(1, 1, 1, -1) + p['shift'].reshape(1, 1, 1, -1)
    if leaky:
        y = jnp.where(y >= 0, y, 0.2 * y)
    return y


def _upsample2x_ref(x):
    N, H, W, C = x.shape
    Uh = jnp.asarray(_bilinear_matrix(H))
    Uw = jnp.asarray(_bilinear_matrix(W))
    x = jnp.einsum('oh,nhwc->nowc', Uh, x, precision=lax.Precision.HIGHEST)
    x = jnp.einsum('pw,nowc->nopc', Uw, x, precision=lax.Precision.HIGHEST)
    return x


def decoder_forward_ref(params, inputs_nhwc):
    num_feats = params['num_feats']
    prev = None
    pred = None
    for i in range(num_feats):
        x = _conv_block_ref(inputs_nhwc[i], params['cvt'][i], leaky=True)
        if prev is not None:
            x = jnp.concatenate([prev, x], axis=-1)
        if i < num_feats - 1:
            pred = _conv_block_ref(_upsample2x_ref(x), params['main'][i], True)
        else:
            pred = _conv_block_ref(x, params['main'][i], False)
        prev = pred
    return pred


# ---------------------------------------------------------------------------
if __name__ == "__main__":
    key = jax.random.PRNGKey(0)
    fmap_base, max_res_log2, num_classes = 32, 4, 3
    N, base_res = 2, 4

    kp, kx = jax.random.split(key)
    params = build_decoder_params(kp, fmap_base, max_res_log2, num_classes)
    in_channels = params['in_channels']                       # [16, 8, 4]

    # Pyramid inputs: resolutions 4, 8, 16 with channels 16, 8, 4 (NHWC).
    inputs_nhwc = []
    for i, c in enumerate(in_channels):
        kx, k = jax.random.split(kx)
        res = base_res * (2 ** i)
        inputs_nhwc.append(jax.random.normal(k, (N, res, res, c), jnp.float32))

    level_ops = [compile_level_operands(params, i, base_res)
                 for i in range(params['num_feats'])]

    # Pallas path
    out_flat = decoder_forward_pallas(level_ops, inputs_nhwc)
    jax.block_until_ready(out_flat)

    final_res = base_res * (2 ** (params['num_feats'] - 1))
    real = level_ops[-1]['real_out_lanes']
    out_nhwc = out_flat[:, :, :real].reshape(N, final_res, final_res, num_classes)
    out_nchw = jnp.transpose(out_nhwc, (0, 3, 1, 2))
    jax.block_until_ready(out_nchw)
    assert out_nchw.shape == (N, num_classes, final_res, final_res), out_nchw.shape

    # f32 reference sanity check (Pallas path uses bf16 MXU operands with f32
    # accumulation and bf16 inter-level activations, hence the tolerance).
    ref_nhwc = decoder_forward_ref(params, inputs_nhwc)
    ref_nchw = jnp.transpose(ref_nhwc, (0, 3, 1, 2))
    np.testing.assert_allclose(np.asarray(out_nchw), np.asarray(ref_nchw),
                               rtol=5e-2, atol=5e-2)

    print("KERNEL_OK")
</pallas_src>

<mosaic_0001>
module attributes {stable_mosaic.version = 11 : i64} {
  func.func @kernel(%arg0: i32, %arg1: memref<1x4x128xbf16, #tpu.memory_space<vmem>>, %arg2: memref<128x384xbf16, #tpu.memory_space<vmem>>, %arg3: memref<2x4x4xf32, #tpu.memory_space<vmem>>, %arg4: memref<1x128xf32, #tpu.memory_space<vmem>>, %arg5: memref<128x384xbf16, #tpu.memory_space<vmem>>, %arg6: memref<3x8x4xf32, #tpu.memory_space<vmem>>, %arg7: memref<1x128xf32, #tpu.memory_space<vmem>>, %arg8: memref<1x8x128xbf16, #tpu.memory_space<vmem>>) attributes {dimension_semantics = [#tpu.dimension_semantics<parallel>], iteration_bounds = array<i64: 2>, scalar_prefetch = 0 : i64, scratch_operands = 0 : i64, tpu.core_type = #tpu.core_type<tc>, window_params = [{transform_indices = @transform_0, window_bounds = array<i64: 1, 4, 128>}, {pipeline_mode = #tpu.pipeline_mode<synchronous>, transform_indices = @transform_1, window_bounds = array<i64: 128, 384>}, {pipeline_mode = #tpu.pipeline_mode<synchronous>, transform_indices = @transform_2, window_bounds = array<i64: 2, 4, 4>}, {pipeline_mode = #tpu.pipeline_mode<synchronous>, transform_indices = @transform_3, window_bounds = array<i64: 1, 128>}, {pipeline_mode = #tpu.pipeline_mode<synchronous>, transform_indices = @transform_4, window_bounds = array<i64: 128, 384>}, {pipeline_mode = #tpu.pipeline_mode<synchronous>, transform_indices = @transform_5, window_bounds = array<i64: 3, 8, 4>}, {pipeline_mode = #tpu.pipeline_mode<synchronous>, transform_indices = @transform_6, window_bounds = array<i64: 1, 128>}, {transform_indices = @transform_7, window_bounds = array<i64: 1, 8, 128>}]} {
    %c0 = arith.constant 0 : index
    %c0_0 = arith.constant 0 : index
    %c0_1 = arith.constant 0 : index
    %0 = vector.load %arg1[%c0, %c0_0, %c0_1] : memref<1x4x128xbf16, #tpu.memory_space<vmem>>, vector<1x4x128xbf16>
    %1 = vector.shape_cast %0 : vector<1x4x128xbf16> to vector<4x128xbf16>
    %c0_2 = arith.constant 0 : index
    %c0_3 = arith.constant 0 : index
    %2 = vector.load %arg2[%c0_2, %c0_3] : memref<128x384xbf16, #tpu.memory_space<vmem>>, vector<128x384xbf16>
    %cst = arith.constant dense<0.000000e+00> : vector<4x384xf32>
    %3 = tpu.matmul %1, %2, %cst {dimension_numbers = #tpu.dot_dimension_numbers<[1], [0], [0], [1], [0, 0, 1, 1], [], []>} : vector<4x128xbf16>, vector<128x384xbf16>, vector<4x384xf32> -> vector<4x384xf32>
    %4 = vector.extract_strided_slice %3 {offsets = [0, 0], sizes = [4, 128], strides = [1, 1]} : vector<4x384xf32> to vector<4x128xf32>
    %5 = vector.extract_strided_slice %3 {offsets = [0, 128], sizes = [4, 128], strides = [1, 1]} : vector<4x384xf32> to vector<4x128xf32>
    %6 = vector.extract_strided_slice %3 {offsets = [0, 256], sizes = [4, 128], strides = [1, 1]} : vector<4x384xf32> to vector<4x128xf32>
    %c0_4 = arith.constant 0 : index
    %c0_5 = arith.constant 0 : index
    %c0_6 = arith.constant 0 : index
    %7 = vector.load %arg3[%c0_4, %c0_5, %c0_6] : memref<2x4x4xf32, #tpu.memory_space<vmem>>, vector<1x4x4xf32>
    %8 = vector.shape_cast %7 : vector<1x4x4xf32> to vector<4x4xf32>
    %cst_7 = arith.constant dense<0.000000e+00> : vector<4x128xf32>
    %9 = tpu.matmul %8, %4, %cst_7 {dimension_numbers = #tpu.dot_dimension_numbers<[1], [0], [0], [1], [0, 0, 1, 1], [], []>} : vector<4x4xf32>, vector<4x128xf32>, vector<4x128xf32> -> vector<4x128xf32>
    %10 = arith.addf %5, %9 : vector<4x128xf32>
    %c1 = arith.constant 1 : index
    %c0_8 = arith.constant 0 : index
    %c0_9 = arith.constant 0 : index
    %11 = vector.load %arg3[%c1, %c0_8, %c0_9] : memref<2x4x4xf32, #tpu.memory_space<vmem>>, vector<1x4x4xf32>
    %12 = vector.shape_cast %11 : vector<1x4x4xf32> to vector<4x4xf32>
    %cst_10 = arith.constant dense<0.000000e+00> : vector<4x128xf32>
    %13 = tpu.matmul %12, %6, %cst_10 {dimension_numbers = #tpu.dot_dimension_numbers<[1], [0], [0], [1], [0, 0, 1, 1], [], []>} : vector<4x4xf32>, vector<4x128xf32>, vector<4x128xf32> -> vector<4x128xf32>
    %14 = arith.addf %10, %13 : vector<4x128xf32>
    %c0_11 = arith.constant 0 : index
    %c0_12 = arith.constant 0 : index
    %15 = vector.load %arg4[%c0_11, %c0_12] : memref<1x128xf32, #tpu.memory_space<vmem>>, vector<1x128xf32>
    %16 = vector.broadcast %15 : vector<1x128xf32> to vector<4x128xf32>
    %17 = arith.addf %14, %16 : vector<4x128xf32>
    %cst_13 = arith.constant 0.000000e+00 : f32
    %18 = vector.broadcast %cst_13 : f32 to vector<4x128xf32>
    %19 = arith.cmpf oge, %17, %18 : vector<4x128xf32>
    %cst_14 = arith.constant 2.000000e-01 : f32
    %20 = vector.broadcast %cst_14 : f32 to vector<4x128xf32>
    %21 = arith.mulf %20, %17 : vector<4x128xf32>
    %22 = arith.select %19, %17, %21 : vector<4x128xi1>, vector<4x128xf32>
    %23 = arith.truncf %22 : vector<4x128xf32> to vector<4x128xbf16>
    %c0_15 = arith.constant 0 : index
    %c0_16 = arith.constant 0 : index
    %24 = vector.load %arg5[%c0_15, %c0_16] : memref<128x384xbf16, #tpu.memory_space<vmem>>, vector<128x384xbf16>
    %cst_17 = arith.constant dense<0.000000e+00> : vector<4x384xf32>
    %25 = tpu.matmul %23, %24, %cst_17 {dimension_numbers = #tpu.dot_dimension_numbers<[1], [0], [0], [1], [0, 0, 1, 1], [], []>} : vector<4x128xbf16>, vector<128x384xbf16>, vector<4x384xf32> -> vector<4x384xf32>
    %c0_18 = arith.constant 0 : index
    %c0_19 = arith.constant 0 : index
    %c0_20 = arith.constant 0 : index
    %26 = vector.load %arg6[%c0_18, %c0_19, %c0_20] : memref<3x8x4xf32, #tpu.memory_space<vmem>>, vector<1x8x4xf32>
    %27 = vector.shape_cast %26 : vector<1x8x4xf32> to vector<8x4xf32>
    %28 = vector.extract_strided_slice %25 {offsets = [0, 0], sizes = [4, 128], strides = [1, 1]} : vector<4x384xf32> to vector<4x128xf32>
    %cst_21 = arith.constant dense<0.000000e+00> : vector<8x128xf32>
    %29 = tpu.matmul %27, %28, %cst_21 {dimension_numbers = #tpu.dot_dimension_numbers<[1], [0], [0], [1], [0, 0, 1, 1], [], []>} : vector<8x4xf32>, vector<4x128xf32>, vector<8x128xf32> -> vector<8x128xf32>
    %c1_22 = arith.constant 1 : index
    %c0_23 = arith.constant 0 : index
    %c0_24 = arith.constant 0 : index
    %30 = vector.load %arg6[%c1_22, %c0_23, %c0_24] : memref<3x8x4xf32, #tpu.memory_space<vmem>>, vector<1x8x4xf32>
    %31 = vector.shape_cast %30 : vector<1x8x4xf32> to vector<8x4xf32>
    %32 = vector.extract_strided_slice %25 {offsets = [0, 128], sizes = [4, 128], strides = [1, 1]} : vector<4x384xf32> to vector<4x128xf32>
    %cst_25 = arith.constant dense<0.000000e+00> : vector<8x128xf32>
    %33 = tpu.matmul %31, %32, %cst_25 {dimension_numbers = #tpu.dot_dimension_numbers<[1], [0], [0], [1], [0, 0, 1, 1], [], []>} : vector<8x4xf32>, vector<4x128xf32>, vector<8x128xf32> -> vector<8x128xf32>
    %34 = arith.addf %29, %33 : vector<8x128xf32>
    %c2 = arith.constant 2 : index
    %c0_26 = arith.constant 0 : index
    %c0_27 = arith.constant 0 : index
    %35 = vector.load %arg6[%c2, %c0_26, %c0_27] : memref<3x8x4xf32, #tpu.memory_space<vmem>>, vector<1x8x4xf32>
    %36 = vector.shape_cast %35 : vector<1x8x4xf32> to vector<8x4xf32>
    %37 = vector.extract_strided_slice %25 {offsets = [0, 256], sizes = [4, 128], strides = [1, 1]} : vector<4x384xf32> to vector<4x128xf32>
    %cst_28 = arith.constant dense<0.000000e+00> : vector<8x128xf32>
    %38 = tpu.matmul %36, %37, %cst_28 {dimension_numbers = #tpu.dot_dimension_numbers<[1], [0], [0], [1], [0, 0, 1, 1], [], []>} : vector<8x4xf32>, vector<4x128xf32>, vector<8x128xf32> -> vector<8x128xf32>
    %39 = arith.addf %34, %38 : vector<8x128xf32>
    %c0_29 = arith.constant 0 : index
    %c0_30 = arith.constant 0 : index
    %40 = vector.load %arg7[%c0_29, %c0_30] : memref<1x128xf32, #tpu.memory_space<vmem>>, vector<1x128xf32>
    %41 = vector.broadcast %40 : vector<1x128xf32> to vector<8x128xf32>
    %42 = arith.addf %39, %41 : vector<8x128xf32>
    %cst_31 = arith.constant 0.000000e+00 : f32
    %43 = vector.broadcast %cst_31 : f32 to vector<8x128xf32>
    %44 = arith.cmpf oge, %42, %43 : vector<8x128xf32>
    %cst_32 = arith.constant 2.000000e-01 : f32
    %45 = vector.broadcast %cst_32 : f32 to vector<8x128xf32>
    %46 = arith.mulf %45, %42 : vector<8x128xf32>
    %47 = arith.select %44, %42, %46 : vector<8x128xi1>, vector<8x128xf32>
    %48 = arith.truncf %47 : vector<8x128xf32> to vector<8x128xbf16>
    %c0_33 = arith.constant 0 : index
    %c0_34 = arith.constant 0 : index
    %c0_35 = arith.constant 0 : index
    %49 = vector.load %arg8[%c0_33, %c0_34, %c0_35] : memref<1x8x128xbf16, #tpu.memory_space<vmem>>, vector<1x8x128xbf16>
    %50 = vector.shape_cast %49 : vector<1x8x128xbf16> to vector<8x128xbf16>
    %51 = vector.shape_cast %48 : vector<8x128xbf16> to vector<1x8x128xbf16>
    tpu.vector_store %arg8[%c0_33, %c0_34, %c0_35], %51 {strides = array<i32>} : memref<1x8x128xbf16, #tpu.memory_space<vmem>>, vector<1x8x128xbf16>,
    return
  }
  func.func @transform_0(%arg0: i32) -> (i32, i32, i32) {
    %c0_i32 = arith.constant 0 : i32
    %c0_i32_0 = arith.constant 0 : i32
    %c0_i32_1 = arith.constant 0 : i32
    return %arg0, %c0_i32, %c0_i32_0 : i32, i32, i32
  }
  func.func @transform_1(%arg0: i32) -> (i32, i32) {
    %c0_i32 = arith.constant 0 : i32
    %c0_i32_0 = arith.constant 0 : i32
    %c0_i32_1 = arith.constant 0 : i32
    return %c0_i32, %c0_i32_0 : i32, i32
  }
  func.func @transform_2(%arg0: i32) -> (i32, i32, i32) {
    %c0_i32 = arith.constant 0 : i32
    %c0_i32_0 = arith.constant 0 : i32
    %c0_i32_1 = arith.constant 0 : i32
    %c0_i32_2 = arith.constant 0 : i32
    return %c0_i32, %c0_i32_0, %c0_i32_1 : i32, i32, i32
  }
  func.func @transform_3(%arg0: i32) -> (i32, i32) {
    %c0_i32 = arith.constant 0 : i32
    %c0_i32_0 = arith.constant 0 : i32
    %c0_i32_1 = arith.constant 0 : i32
    return %c0_i32, %c0_i32_0 : i32, i32
  }
  func.func @transform_4(%arg0: i32) -> (i32, i32) {
    %c0_i32 = arith.constant 0 : i32
    %c0_i32_0 = arith.constant 0 : i32
    %c0_i32_1 = arith.constant 0 : i32
    return %c0_i32, %c0_i32_0 : i32, i32
  }
  func.func @transform_5(%arg0: i32) -> (i32, i32, i32) {
    %c0_i32 = arith.constant 0 : i32
    %c0_i32_0 = arith.constant 0 : i32
    %c0_i32_1 = arith.constant 0 : i32
    %c0_i32_2 = arith.constant 0 : i32
    return %c0_i32, %c0_i32_0, %c0_i32_1 : i32, i32, i32
  }
  func.func @transform_6(%arg0: i32) -> (i32, i32) {
    %c0_i32 = arith.constant 0 : i32
    %c0_i32_0 = arith.constant 0 : i32
    %c0_i32_1 = arith.constant 0 : i32
    return %c0_i32, %c0_i32_0 : i32, i32
  }
  func.func @transform_7(%arg0: i32) -> (i32, i32, i32) {
    %c0_i32 = arith.constant 0 : i32
    %c0_i32_0 = arith.constant 0 : i32
    %c0_i32_1 = arith.constant 0 : i32
    return %arg0, %c0_i32, %c0_i32_0 : i32, i32, i32
  }
}

</mosaic_0001>

<bundles_post_ra>
// kernel: tpu_custom_call.1
= control target key start
LH: loop header
LB: loop body
LE: loop exit
PB: predicated region body
PF: predicated region fallthrough
CT: control target
= control target key end

     0   :  { %12 = vsyncpa [#allocation3], 0  ;;  %s1969_s0 = inlined_call_operand.vmem [shape: bf16[2,4,128], index: 0, kind: input, shape index: {}]   ;;  %s1970_s1 = inlined_call_operand.hbm [shape: bf16[128,384], index: 1, kind: input, shape index: {}]   ;;  %s1971_s2 = inlined_call_operand.vmem [shape: f32[2,4,4], index: 2, kind: input, shape index: {}]   ;;  %s1972_s3 = inlined_call_operand.vmem [shape: f32[1,128], index: 3, kind: input, shape index: {}]   ;;  %s1973_s4 = inlined_call_operand.hbm [shape: bf16[128,384], index: 4, kind: input, shape index: {}]   ;;  %s1974_s5 = inlined_call_operand.vmem [shape: f32[3,8,4], index: 5, kind: input, shape index: {}]   ;;  %s1975_s6 = inlined_call_operand.vmem [shape: f32[1,128], index: 6, kind: input, shape index: {}]   ;;  %s1976_s7 = inlined_call_operand.hbm [shape: bf16[2,8,128], index: 7, kind: output, shape index: {}]  }
   0x1   :  { %13 = vsyncpa [#allocation6], 0 }
   0x2   :  { %14 = vsyncpa [#allocation4], 0 }
   0x3   :  { %16 = vsyncpa [#allocation4 + $0x1], 0  ;;  %s1770_s24 = smov 0   ;;  %s1772_s25 = smov 0  }
   0x4   :  { %s1774_s26 = smov 0   ;;  %s1776_s27 = smov 0  }
   0x5 LB: > { %s1791_s28 = sadd.s32 4294967295, %s1720_s27   ;;  %s1301_s29 = sadd.s32 4294967294, %s1720_s27   ;;  %s1720_s27 = sphi %s1776_s27, %s1990_s27   ;;  %s1716_s26 = sphi %s1774_s26, %s1989_s26   ;;  %s1712_s25 = sphi %s1772_s25, %s1988_s25   ;;  %s1708_s24 = sphi %s1770_s24, %s1987_s24  }
   0x6   : > { %s1795_s30 = sadd.s32 1, %s1720_s27   ;;  %s181_s8 = sadd.s32 1, %s1716_s26 }
   0x7   : > { %s178_s9 = ssub.s32 %s1720_s27, %s1795_s30  ;;  %p191_p0 = scmp.ne.s32.totalorder %s1716_s26, %s1712_s25 }
   0x8   : > { %p179_p1 = scmp.eq.s32.totalorder %s178_s9, 0  ;;  %p192_p2 = scmp.eq.s32.totalorder %s1791_s28, 1 }
   0x9   : > { %p197_p3 = scmp.ne.s32.totalorder %s1712_s25, %s1708_s24  ;;  %p198_p4 = scmp.eq.s32.totalorder %s1301_s29, 1 }
   0xa   : > { %s1806_s10 = scalar_select %p179_p1, %s1716_s26, %s181_s8  }
   0xb   : > { %p1808_p5 = por %p192_p2, %p191_p0  ;;  %p1812_p6 = por %p198_p4, %p197_p3 }
   0xc   : > { %p1302_p7 = scmp.ge.s32.totalorder %s1720_s27, 1  ;;  %p205_p8 = scmp.lt.s32.totalorder %s1720_s27, 3 }
   0xd   : > { %s1979_s12 = scalar_select %p1812_p6, 1, 0 }
   0xe   : > { %p1977_p9 = scmp.eq.s32.totalorder %s1791_s28, 0  ;;  %p1819_p10 = pnand %p1302_p7, %p205_p8 }
   0xf   : > { %s1722_s14 = smov [#allocation2]   ;;  %s1723_s17 = smov [#allocation5]  }
  0x10   : > { %s217_s15 = sshll.u32 %s1722_s14, 4  ;;  %p1481_p11 = pneg %p1819_p10  ;;  %s218_s15 = int_to_ptr.vmem [resolvable:$true] %s217_s15 }
  0x11   : > { %s236_s18 = sshll.u32 %s1723_s17, 4  ;;  %s1611_s19 = scalar_lea.vmem %s218_s15, 3072  ;;  %s237_s18 = int_to_ptr.vmem [resolvable:$true] %s236_s18 }
  0x12   : > { %p1827_p12 = pnand %p1977_p9, %p1481_p11  ;;  %p1612_p0 = scmp.ne.s32.totalorder %s218_s15, %s1611_s19 }
  0x13   : > { %p1619_p3 = scmp.lt.s32.totalorder %s218_s15, %s218_s15  ;;  %p1620_p4 = scmp.lt.s32.totalorder %s1611_s19, %s1611_s19 }
  0x14   : > { %p1602_p13 = pneg %p1827_p12 }
  0x15   : > { %p1621_p7 = por %p1620_p4, %p1619_p3 }
  0x16   : > { %p1614_p1 = pnand %p1612_p0, %p1602_p13 }
  0x18   : > { %p1615_p2 = pneg %p1614_p1 }
  0x1a   : > { %p1622_p8 = pnand %p1621_p7, %p1615_p2 }
  0x1c   : > { %1625 = shalt.err (!%p1622_p8)
}
  0x1d   : > { %s1724_s20 = smov 192   ;;  %s1725_s21 = smov 12  }
  0x1e   : > { %1484 = dma.hbm_to_vmem [thread:$0]  (!%p1827_p12), %s1970_s1, 3072, %s218_s15, [#allocation3], %s1724_s20, %s1724_s20, %s1725_s21  }
  0x1f   : > { %s1637_s29 = scalar_lea.vmem %s237_s18, 3072  ;;  %p1645_p9 = scmp.lt.s32.totalorder %s237_s18, %s237_s18 }
  0x20   : > { %p1638_p11 = scmp.ne.s32.totalorder %s237_s18, %s1637_s29  ;;  %p1646_p6 = scmp.lt.s32.totalorder %s1637_s29, %s1637_s29 }
  0x22   : > { %p1640_p0 = pnand %p1638_p11, %p1602_p13  ;;  %p1647_p3 = por %p1646_p6, %p1645_p9 }
  0x24   : > { %p1641_p1 = pneg %p1640_p0 }
  0x26   : > { %p1648_p2 = pnand %p1647_p3, %p1641_p1 }
  0x28   : > { %1651 = shalt.err (!%p1648_p2)
}
  0x29   : > { %1487 = dma.hbm_to_vmem [thread:$0]  (!%p1827_p12), %s1973_s4, 3072, %s237_s18, [#allocation6], %s1724_s20, %s1724_s20, %s1725_s21  }
  0x2a   : > { %265 = sbr.rel (%p1819_p10) target bundleno = 898 (0x382), region = 48  ;;  %p1982_p4 = scmp.eq.s32.totalorder (!%p1819_p10), %s1791_s28, 0 }
  0x2f   : > { %1695 = dma.done.wait (%p1982_p4), [#allocation3], 3072   ;;  %p1983_p13 = pmov %p1982_p4 }
  0x30   : > { %p1984_p7 = pmov %p1982_p4 }
  0x31   : > { %1697 = vsyncadd (%p1983_p13), [#allocation3], 4294964224 }
  0x32   : > { %1699 = dma.done.wait (%p1984_p7), [#allocation6], 3072   ;;  %p1985_p6 = pmov %p1982_p4 }
  0x33   : > { %v1726_v0 = vmov 0.0   ;;  %vm1727_vm0 = vmmov 0   ;;  %v1728_v1 = vmov 0   ;;  %v1536_v2 = vld [vmem:[#allocation2 + $0xac] ss:$12 sps:$4 sm:$0xff]   ;;  %p300_p9 = scmp.lt.s32.totalorder %s1791_s28, 1 }
  0x34   : > { %1701 = vsyncadd (%p1985_p6), [#allocation6], 4294964224  ;;  %1406 = vmatprep.subr.bf16.mxu1 %v1726_v0  ;;  %1422 = vmatprep.mubr.msk.bf16.mxu1 %vm1727_vm0, %v1726_v0  ;;  %v1538_v3 = vld [vmem:[#allocation2 + $0xb0] ss:$12 sps:$4 sm:$0xff]   ;;  %v1539_v4 = vld [vmem:[#allocation2 + $0xa8] ss:$12 sps:$4 sm:$0xff]  }
  0x35   : > { %498 = vmatprep.mubr.bf16.mxu0 %v1728_v1  ;;  %466 = vmatprep.subr.bf16.mxu0 %v1536_v2  ;;  %v1540_v5 = vld [vmem:[#allocation2 + $0x94] ss:$12 sps:$4 sm:$0xff]   ;;  %v1542_v6 = vld [vmem:[#allocation2 + $0x98] ss:$12 sps:$4 sm:$0xff]   ;;  %v1543_v7 = vld [vmem:[#allocation2 + $0x90] ss:$12 sps:$4 sm:$0xff]  }
  0x36   : > { %1407 = vmatpush3.bf16.msra.mxu1 %v1538_v3  ;;  %467 = vmatpush1.bf16.msra.mxu0 %v1539_v4  ;;  %v1544_v8 = vld [vmem:[#allocation2 + $0x7c] ss:$12 sps:$4 sm:$0xff]   ;;  %v1546_v9 = vld [vmem:[#allocation2 + $0x80] ss:$12 sps:$4 sm:$0xff]   ;;  %v1547_v10 = vld [vmem:[#allocation2 + $0x78] ss:$12 sps:$4 sm:$0xff]  }
  0x37   : > { %1408 = vmatprep.subr.bf16.mxu1 %v1726_v0  ;;  %468 = vmatprep.subr.bf16.mxu0 %v1540_v5  ;;  %v1548_v11 = vld [vmem:[#allocation2 + $0x64] ss:$12 sps:$4 sm:$0xff]   ;;  %v1550_v12 = vld [vmem:[#allocation2 + $0x68] ss:$12 sps:$4 sm:$0xff]   ;;  %v1551_v13 = vld [vmem:[#allocation2 + $0x60] ss:$12 sps:$4 sm:$0xff]  }
  0x38   : > { %v1552_v14 = vld [vmem:[#allocation2 + $0x4c] ss:$12 sps:$4 sm:$0xff]   ;;  %v1554_v15 = vld [vmem:[#allocation2 + $0x50] ss:$12 sps:$4 sm:$0xff]   ;;  %v1555_v16 = vld [vmem:[#allocation2 + $0x48] ss:$12 sps:$4 sm:$0xff]  }
  0x39   : > { %v1556_v17 = vld [vmem:[#allocation2 + $0x34] ss:$12 sps:$4 sm:$0xff]   ;;  %v1558_v18 = vld [vmem:[#allocation2 + $0x38] ss:$12 sps:$4 sm:$0xff]   ;;  %v1559_v19 = vld [vmem:[#allocation2 + $0x30] ss:$12 sps:$4 sm:$0xff]  }
  0x3a   : > { %1409 = vmatpush3.bf16.msra.mxu1 %v1542_v6  ;;  %469 = vmatpush1.bf16.msra.mxu0 %v1543_v7  ;;  %v1560_v20 = vld [vmem:[#allocation2 + $0x1c] ss:$12 sps:$4 sm:$0xff]   ;;  %v1562_v21 = vld [vmem:[#allocation2 + $0x20] ss:$12 sps:$4 sm:$0xff]   ;;  %s301_s13 = scalar_select %p300_p9, %s1791_s28, 1  ;;  %vm552_vm1 = vcmask 1043456  }
  0x3b   : > { %1410 = vmatprep.subr.bf16.mxu1 %v1726_v0  ;;  %470 = vmatprep.subr.bf16.mxu0 %v1544_v8  ;;  %v1563_v22 = vld [vmem:[#allocation2 + $0x18] ss:$12 sps:$4 sm:$0xff]   ;;  %v1566_v24 = vld [vmem:[#allocation2 + $0x8] ss:$12 sps:$4 sm:$0xff]   ;;  %v1567_v25 = vld [vmem:[#allocation2] ss:$12 sps:$4 sm:$0xff]  }
  0x3c   : > { %v1564_v23 = vld [vmem:[#allocation2 + $0x4] ss:$12 sps:$4 sm:$0xff]   ;;  %s1310_s14 = sshll.u32 %s301_s13, 1  ;;  %vm548_vm2 = vcmask 31744   ;;  %v1570_v28 = vld [vmem:[#allocation5 + $0xac] ss:$12 sps:$4 sm:$0xff]  }
  0x3d   : > { %s303_s17 = scalar_lea.vmem %s1969_s0, %s1310_s14  ;;  %v1337_v27 = vld [vmem:[%s1971_s2 + $0x4] sm:$0xf]  ;;  %v547_v30 = vld [vmem:[%s1971_s2] sm:$0xf]  ;;  %v1568_v31 = vld [vmem:[#allocation5 + $0xa8] ss:$12 sps:$4 sm:$0xff]  }
  0x3e   : > { %1411 = vmatpush3.bf16.msra.mxu1 %v1546_v9  ;;  %471 = vmatpush1.bf16.msra.mxu0 %v1547_v10  ;;  %v305_v26 = vld [vmem:[%s303_s17] sm:$0x3]  ;;  %v1571_v33 = vld [vmem:[#allocation5 + $0xb0] ss:$12 sps:$4 sm:$0xff]   ;;  %v1575_v40 = vld [vmem:[#allocation5 + $0x98] ss:$12 sps:$4 sm:$0xff]  }
  0x3f   : > { %1412 = vmatprep.subr.bf16.mxu1 %v1726_v0  ;;  %472 = vmatprep.subr.bf16.mxu0 %v1548_v11  ;;  %v1574_v34 = vld [vmem:[#allocation5 + $0x94] ss:$12 sps:$4 sm:$0xff]   ;;  %v1572_v38 = vld [vmem:[#allocation5 + $0x90] ss:$12 sps:$4 sm:$0xff]   ;;  %v1576_v44 = vld [vmem:[#allocation5 + $0x78] ss:$12 sps:$4 sm:$0xff]  }
  0x40   : > { %v1578_v41 = vld [vmem:[#allocation5 + $0x7c] ss:$12 sps:$4 sm:$0xff]   ;;  %v1579_v45 = vld [vmem:[#allocation5 + $0x80] ss:$12 sps:$4 sm:$0xff]   ;;  %v1582_v46 = vld [vmem:[#allocation5 + $0x64] ss:$12 sps:$4 sm:$0xff]  }
  0x41   : > { %v1580_v47 = vld [vmem:[#allocation5 + $0x60] ss:$12 sps:$4 sm:$0xff]   ;;  %v1583_v48 = vld [vmem:[#allocation5 + $0x68] ss:$12 sps:$4 sm:$0xff]   ;;  %v1587_v51 = vld [vmem:[#allocation5 + $0x50] ss:$12 sps:$4 sm:$0xff]  }
  0x42   : > { %1413 = vmatpush3.bf16.msra.mxu1 %v1550_v12  ;;  %473 = vmatpush1.bf16.msra.mxu0 %v1551_v13  ;;  %v1586_v49 = vld [vmem:[#allocation5 + $0x4c] ss:$12 sps:$4 sm:$0xff]   ;;  %v1584_v50 = vld [vmem:[#allocation5 + $0x48] ss:$12 sps:$4 sm:$0xff]   ;;  %v1588_v53 = vld [vmem:[#allocation5 + $0x30] ss:$12 sps:$4 sm:$0xff]  }
  0x43   : > { %1414 = vmatprep.subr.bf16.mxu1 %v1726_v0  ;;  %474 = vmatprep.subr.bf16.mxu0 %v1552_v14  ;;  %v1590_v52 = vld [vmem:[#allocation5 + $0x34] ss:$12 sps:$4 sm:$0xff]   ;;  %v1591_v54 = vld [vmem:[#allocation5 + $0x38] ss:$12 sps:$4 sm:$0xff]   ;;  %v1594_v55 = vld [vmem:[#allocation5 + $0x1c] ss:$12 sps:$4 sm:$0xff]  }
  0x44   : > { %v1592_v56 = vld [vmem:[#allocation5 + $0x18] ss:$12 sps:$4 sm:$0xff]   ;;  %v1595_v57 = vld [vmem:[#allocation5 + $0x20] ss:$12 sps:$4 sm:$0xff]   ;;  %v1599_v60 = vld [vmem:[#allocation5 + $0x8] ss:$12 sps:$4 sm:$0xff]  }
  0x45   : > { %v1598_v58 = vld [vmem:[#allocation5 + $0x4] ss:$12 sps:$4 sm:$0xff]   ;;  %v1596_v59 = vld [vmem:[#allocation5] ss:$12 sps:$4 sm:$0xff]   ;;  %s297_s16 = sand.u32 1, %s1712_s25   ;;  %s1375_s20 = sshll.u32 %s1791_s28, 6 }
  0x46   : > { %1415 = vmatpush3.bf16.msra.mxu1 %v1554_v15  ;;  %475 = vmatpush1.bf16.msra.mxu0 %v1555_v16  ;;  %v1340_v2 = vld [vmem:[%s1972_s3] ss:$0 sm:$0xff]  ;;  %v1365_v12 = vld [vmem:[%s1974_s5 + $0x8] sm:$0xff]  ;;  %s1309_s17 = sshll.u32 %s297_s16, 2  ;;  %s1218_s8 = scalar_lea.hbm %s1976_s7, %s1375_s20 }
  0x47   : > { %1416 = vmatprep.subr.bf16.mxu1 %v1726_v0  ;;  %476 = vmatprep.subr.bf16.mxu0 %v1556_v17  ;;  %v959_v9 = vld [vmem:[%s1974_s5] sm:$0xff]  ;;  %v1370_v17 = vld [vmem:[%s1974_s5 + $0x10] sm:$0xff]  ;;  %s299_s21 = scalar_lea.vmem [#allocation7], %s1309_s17  ;;  %s1207_s9 = scalar_lea.sflag [#allocation4], %s297_s16 }
  0x48   : > { %s1220_s22 = sshll.u32 %s299_s21, 4  ;;  %s1729_s14 = smov [#allocation7]   ;;  %s1221_s22 = int_to_ptr.vmem [resolvable:$true] %s1220_s22 }
  0x49   : > { %s1652_s13 = scalar_lea.vmem %s1221_s22, 64  ;;  %s1656_s15 = sshll.u32 %s1729_s14, 4  ;;  %s1657_s15 = int_to_ptr.vmem [resolvable:$false] %s1656_s15 }
  0x4a   : > { %1417 = vmatpush3.bf16.msra.mxu1 %v1558_v18  ;;  %477 = vmatpush1.bf16.msra.mxu0 %v1559_v19  ;;  %p1653_p10 = scmp.ne.s32.totalorder %s1221_s22, %s1652_s13  ;;  %s1658_s28 = scalar_lea.vmem %s1657_s15, 128 }
  0x4b   : > { %1418 = vmatprep.subr.bf16.mxu1 %v1726_v0  ;;  %478 = vmatprep.subr.bf16.mxu0 %v1560_v20  ;;  %p1659_p11 = scmp.lt.s32.totalorder %s1221_s22, %s1657_s15  ;;  %p1660_p0 = scmp.lt.s32.totalorder %s1658_s28, %s1652_s13 }
  0x4c   : > { %p1654_p12 = pnand %p1653_p10, %p1808_p5 }
  0x4d   : > { %p1661_p1 = por %p1660_p0, %p1659_p11 }
  0x4e   : > { %1419 = vmatpush3.bf16.msra.mxu1 %v1562_v21  ;;  %479 = vmatpush1.bf16.msra.mxu0 %v1563_v22  ;;  %p1655_p8 = pneg %p1654_p12 }
  0x4f   : > { %1420 = vmatprep.subr.bf16.mxu1 %v1726_v0  ;;  %480 = vmatprep.subr.bf16.mxu0 %v1564_v23 }
  0x50   : > { %p1662_p3 = pnand %p1661_p1, %p1655_p8 }
  0x52   : > { %1421 = vmatpush3.bf16.msra.mxu1 %v1566_v24  ;;  %481 = vmatpush1.bf16.msra.mxu0 %v1567_v25 }
  0x53   : > { %1431 = vmatprep.subr.mxu1 %v1726_v0  ;;  %1426 = vmatprep.subr.mxu0 %v1726_v0 }
  0x55   : > { %1423 = vmatmul.mubr.bf16.vlgmr.msra.gmra.mxu1 %v305_v26  ;;  %499 = vmatmul.mubr.bf16.vlgmr.msra.gmra.mxu0 %v305_v26 }
  0x56   : > { %1433 = vmatprep.mubr.msk.f32.mxu1 %vm1727_vm0, %v1726_v0  ;;  %1428 = vmatprep.mubr.msk.f32.mxu0 %vm1727_vm0, %v1726_v0 }
 0x115   : > { %v541_v29 = vpop.f32.mrf.mxu1  ;;  %v500_v32 = vpop.f32.mrf.mxu0 }
 0x116   : > { %1432 = vmatpush3.msk.msra.mxu1 %vm552_vm1, %v541_v29  ;;  %1427 = vmatpush3.msk.msra.mxu0 %vm552_vm1, %v500_v32 }
 0x117   : > { %v1424_v35 = vpop.f32.mrf.mxu1  ;;  %1434 = vmatmul.mubr.msk.f32.vlgmr.msra.gmra.mxu1 %vm548_vm2, %v1337_v27  ;;  %v1890_v36 = vpop.f32.mrf.mxu0  ;;  %1429 = vmatmul.mubr.msk.f32.vlgmr.msra.gmra.mxu0 %vm548_vm2, %v547_v30 }
 0x118   : > { %878 = vmatprep.subr.bf16.mxu0 %v1570_v28  ;;  %1436 = vmatprep.subr.bf16.mxu1 %v1726_v0 }
 0x119   : > { %v544_v37 = vpop.f32.mrf.mxu1  ;;  %879 = vmatpush1.bf16.msra.mxu0 %v1568_v31  ;;  %v504_v39 = vpop.f32.mrf.mxu0  ;;  %1437 = vmatpush3.bf16.msra.mxu1 %v1571_v33 }
 0x11a   : > { %880 = vmatprep.subr.bf16.mxu0 %v1574_v34  ;;  %1438 = vmatprep.subr.bf16.mxu1 %v1726_v0 }
 0x11b   : > { %v1425_v42 = vpop.f32.mrf.mxu1  ;;  %910 = vmatprep.mubr.bf16.mxu0 %v1728_v1  ;;  %v505_v43 = vpop.f32.mrf.mxu0  ;;  %1452 = vmatprep.mubr.msk.bf16.mxu1 %vm1727_vm0, %v1726_v0 }
 0x11d   : > { %881 = vmatpush1.bf16.msra.mxu0 %v1572_v38  ;;  %1439 = vmatpush3.bf16.msra.mxu1 %v1575_v40 }
 0x11e   : > { %882 = vmatprep.subr.bf16.mxu0 %v1578_v41  ;;  %1440 = vmatprep.subr.bf16.mxu1 %v1726_v0 }
 0x121   : > { %883 = vmatpush1.bf16.msra.mxu0 %v1576_v44  ;;  %1441 = vmatpush3.bf16.msra.mxu1 %v1579_v45 }
 0x122   : > { %884 = vmatprep.subr.bf16.mxu0 %v1582_v46  ;;  %1442 = vmatprep.subr.bf16.mxu1 %v1726_v0 }
 0x125   : > { %885 = vmatpush1.bf16.msra.mxu0 %v1580_v47  ;;  %1443 = vmatpush3.bf16.msra.mxu1 %v1583_v48 }
 0x126   : > { %886 = vmatprep.subr.bf16.mxu0 %v1586_v49  ;;  %1444 = vmatprep.subr.bf16.mxu1 %v1726_v0 }
 0x129   : > { %887 = vmatpush1.bf16.msra.mxu0 %v1584_v50  ;;  %1445 = vmatpush3.bf16.msra.mxu1 %v1587_v51 }
 0x12a   : > { %1446 = vmatprep.subr.bf16.mxu1 %v1726_v0  ;;  %888 = vmatprep.subr.bf16.mxu0 %v1590_v52 }
 0x12d   : > { %889 = vmatpush1.bf16.msra.mxu0 %v1588_v53  ;;  %1447 = vmatpush3.bf16.msra.mxu1 %v1591_v54 }
 0x12e   : > { %1448 = vmatprep.subr.bf16.mxu1 %v1726_v0  ;;  %890 = vmatprep.subr.bf16.mxu0 %v1594_v55 }
 0x131   : > { %891 = vmatpush1.bf16.msra.mxu0 %v1592_v56  ;;  %1449 = vmatpush3.bf16.msra.mxu1 %v1595_v57 }
 0x132   : > { %1450 = vmatprep.subr.bf16.mxu1 %v1726_v0  ;;  %892 = vmatprep.subr.bf16.mxu0 %v1598_v58 }
 0x135   : > { %893 = vmatpush1.bf16.msra.mxu0 %v1596_v59  ;;  %1451 = vmatpush3.bf16.msra.mxu1 %v1599_v60 }
 0x136   : > { %1461 = vmatprep.subr.mxu1 %v1726_v0  ;;  %1456 = vmatprep.subr.mxu0 %v1726_v0 }
 0x1d7   : > { %v701_v61 = vpop.f32.mrf.mxu1  ;;  %v622_v62 = vpop.f32.mrf.mxu0 }
 0x1d8   : > { %v626_v63 = vadd.f32 %v622_v62, %v1890_v36 }
 0x1d9   : > { %v1435_v1 = vpop.f32.mrf.mxu1  ;;  %v1430_v3 = vpop.f32.mrf.mxu0 }
 0x1da   : > { %v705_v4 = vadd.f32 %v701_v61, %v626_v63 }
 0x1dc   : > { %v713_v5 = vadd.f32 %v1340_v2, %v705_v4 }
 0x1de   : > { %vm714_vm3 = vcmp.ge.f32.partialorder %v713_v5, 0.0  ;;  %v715_v6 = vmul.f32 0.2, %v713_v5 }
 0x1e0   : > { %v716_v7 = vsel %vm714_vm3, %v713_v5, %v715_v6 }
 0x1e1   : > { %v717_v8 = vpack.c.bf16 %v716_v7, %v716_v7 }
 0x1e3   : > { %911 = vmatmul.mubr.bf16.vlgmr.msra.gmra.mxu0 %v717_v8  ;;  %1453 = vmatmul.mubr.bf16.vlgmr.msra.gmra.mxu1 %v717_v8 }
 0x1e4   : > { %1458 = vmatprep.mubr.msk.f32.mxu0 %vm1727_vm0, %v1726_v0  ;;  %1463 = vmatprep.mubr.msk.f32.mxu1 %vm1727_vm0, %v1726_v0 }
 0x2a3   : > { %v912_v10 = vpop.f32.mrf.mxu0  ;;  %v953_v11 = vpop.f32.mrf.mxu1 }
 0x2a4   : > { %1462 = vmatpush3.msk.msra.mxu1 %vm552_vm1, %v912_v10 }
 0x2a5   : > { %v914_v13 = vpop.f32.mrf.mxu0  ;;  %v1454_v14 = vpop.f32.mrf.mxu1  ;;  %1464 = vmatmul.mubr.msk.f32.vlgmr.msra.gmra.mxu1 %vm548_vm2, %v959_v9 }
 0x2a6   : > { %1457 = vmatpush3.msk.msra.mxu0 %vm552_vm1, %v914_v13 }
 0x2a7   : > { %v916_v15 = vpop.f32.mrf.mxu0  ;;  %v956_v16 = vpop.f32.mrf.mxu1  ;;  %1466 = vmatprep.subr.mxu0 %v1726_v0  ;;  %1459 = vmatmul.mubr.msk.f32.vlgmr.msra.gmra.mxu0 %vm548_vm2, %v1365_v12 }
 0x2a8   : > { %1467 = vmatpush3.msk.msra.mxu0 %vm552_vm1, %v953_v11  ;;  %1468 = vmatprep.mubr.msk.f32.mxu0 %vm1727_vm0, %v1726_v0  ;;  %v1373_v0 = vld [vmem:[%s1975_s6] ss:$0 sm:$0xff] }
 0x2a9   : > { %v917_v18 = vpop.f32.mrf.mxu0  ;;  %v1455_v19 = vpop.f32.mrf.mxu1 }
 0x2ab   : > { %1469 = vmatmul.mubr.msk.f32.vlgmr.msra.gmra.mxu0 %vm548_vm2, %v1370_v17 }
 0x365   : > { %v1110_v20 = vpop.f32.mrf.mxu1 }
 0x367   : > { %v1034_v21 = vpop.f32.mrf.mxu0  ;;  %v1465_v22 = vpop.f32.mrf.mxu1 }
 0x368   : > { %v1111_v24 = vadd.f32 %v1110_v20, %v1034_v21 }
 0x369   : > { %v1460_v23 = vpop.f32.mrf.mxu0 }
 0x36b   : > { %v1188_v25 = vpop.f32.mrf.mxu0 }
 0x36c   : > { %v1192_v26 = vadd.f32 %v1188_v25, %v1111_v24 }
 0x36d   : > { %v1470_v27 = vpop.f32.mrf.mxu0 }
 0x36e   : > { %v1200_v28 = vadd.f32 %v1373_v0, %v1192_v26 }
 0x370   : > { %vm1201_vm4 = vcmp.ge.f32.partialorder %v1200_v28, 0.0  ;;  %v1202_v29 = vmul.f32 0.2, %v1200_v28 }
 0x372   : > { %v1203_v30 = vsel %vm1201_vm4, %v1200_v28, %v1202_v29 }
 0x373   : > { %v1204_v31 = vpack.c.bf16 %v1203_v30, %v1203_v30 }
 0x375   : > { %1205 = vst [vmem:[%s299_s21] sm:$0xf] %v1204_v31 }
 0x376   : > { %1665 = shalt.err (!%p1662_p3)
}
 0x377   : > { %s1666_s17 = scalar_lea.hbm %s1218_s8, 64  ;;  %s1670_s19 = scalar_lea.hbm %s1976_s7, 128 }
 0x378   : > { %p1667_p2 = scmp.ne.s32.totalorder %s1218_s8, %s1666_s17  ;;  %p1671_p7 = scmp.lt.s32.totalorder %s1218_s8, %s1976_s7 }
 0x379   : > { %p1672_p6 = scmp.lt.s32.totalorder %s1670_s19, %s1666_s17 }
 0x37a   : > { %p1668_p4 = pnand %p1667_p2, %p1808_p5 }
 0x37b   : > { %p1673_p9 = por %p1672_p6, %p1671_p7 }
 0x37c   : > { %p1669_p13 = pneg %p1668_p4 }
 0x37e   : > { %p1674_p10 = pnand %p1673_p9, %p1669_p13 }
 0x380   : > { %1677 = shalt.err (!%p1674_p10)
}
 0x381   : > { %1479 = dma.vmem_to_hbm [thread:$0]  (%p1808_p5), %s1221_s22, 64, %s1218_s8, %s1207_s9  }
 0x382 PF: > { %p1496_p12 = scmp.ge.s32.totalorder %s1720_s27, 2  ;;  %s1232_s23 = sand.u32 1, %s1708_s24  }
 0x383   : > { %p1986_p8 = scmp.ne.s32.totalorder %s1979_s12, 0  ;;  %s1233_s29 = scalar_lea.sflag [#allocation4], %s1232_s23 }
 0x385   : > { %p1489_p11 = pnand %p1496_p12, %p1986_p8 }
 0x387   : > { %p1490_p0 = pneg %p1489_p11 }
 0x389   : > { %1703 = dma.done.wait (%p1490_p0), %s1233_s29, 64  }
 0x38a   : > { %1705 = vsyncadd (%p1490_p0), %s1233_s29, 4294967232  ;;  %p19_p1 = scmp.ge.s32.totalorder %s1795_s30, 4   ;;  %s1987_s24 = smov %s1712_s25 }
 0x38b   : > { %s1988_s25 = smov %s1716_s26  ;;  %s1989_s26 = smov %s1806_s10 }
 0x38c   : > { %s1990_s27 = smov %s1795_s30  ;;  %21 = sbr.rel (!%p19_p1) target bundleno = 5 (0x5), region = 95 }
 0x391   :  { %1238 = vsyncpa [#allocation3], 1 }
 0x392   :  { %1240 = vsyncpa [#allocation3 + $0x1], 1 }
 0x393   :  { %1241 = vsyncpa [#allocation6], 1 }
 0x394   :  { %1242 = vsyncpa [#allocation4], 1 }
 0x395   :  { %1244 = vsyncpa [#allocation4 + $0x1], 1 }

</bundles_post_ra>
